<compile_context>
chip_gen: v7x
topology: tpu7x:2x2x1
jax: 0.10.0
libtpu: 0.0.40
codegen_flags: <defaults>
</compile_context>

<pallas_src>
import math

import numpy as np
import jax
import jax.numpy as jnp
from jax.experimental import pallas as pl
from jax.experimental.pallas import tpu as pltpu

# dot_general dims for A(D,HW) @ B(S,HW)^T -> (D,S): contract minor dim of both.
_NT_DIMS = (((1,), (1,)), ((), ()))


# ----------------------------------------------------------------------------
# Fused per-image kernel factory (channels-major, HW on lanes).
# ----------------------------------------------------------------------------
def _make_fused_kernel(H, W, Cin, D, S, net_depth):
    HW = H * W
    n_mid = net_depth - 1
    offsets = [(dy - 1, dx - 1) for dy in range(3) for dx in range(3)]

    def kernel(*refs):
        # ---- unpack refs: inputs then outputs (fixed layout) ---------------
        x_ref, mask_ref, w0_ref, b0_ref, protos_ref = refs[:5]
        mid_refs = refs[5:5 + 2 * n_mid]
        w1_ref, b1_ref = refs[5 + 2 * n_mid:7 + 2 * n_mid]
        deno_ref, sims_ref, spix_ref = refs[7 + 2 * n_mid:10 + 2 * n_mid]

        x = x_ref[0]                                          # (Cin, HW) f32

        # ---- 3x3 'same' conv, channels-major im2col -------------------------
        # tap[p] = f[p + oh*W + ow] via a flat lane roll, zeroed at the border
        # by a precomputed 0/1 mask row; one (cout, 9*cin) @ (9*cin, HW) matmul.
        def conv3x3(f, w_ref, b_ref):
            taps = []
            for t, (oh, ow) in enumerate(offsets):
                off = oh * W + ow
                if off == 0:                                  # centre tap
                    taps.append(f)
                    continue
                shifted = pltpu.roll(f, (-off) % HW, axis=1)  # out[p] = f[p+off]
                taps.append(shifted * mask_ref[pl.ds(t, 1), :])
            patches = jnp.concatenate(taps, axis=0).astype(jnp.bfloat16)
            out = jnp.dot(w_ref[...], patches,
                          preferred_element_type=jnp.float32)  # (cout, HW)
            return out + b_ref[...]                            # (cout,1) bcast

        # ---- conv0 ----------------------------------------------------------
        ftrs = conv3x3(x, w0_ref, b0_ref)                      # (D, HW) f32

        # ---- sims: prototype softmax (stand-in for SuperpixelNetwork) -------
        logits = jnp.dot(protos_ref[...], ftrs.astype(jnp.bfloat16),
                         preferred_element_type=jnp.float32)   # (S, HW) f32

        # ---- spix = argmax over superpixels, taken on the raw logits --------
        mx = jnp.max(logits, axis=0, keepdims=True)            # (1, HW)
        ids = jax.lax.broadcasted_iota(jnp.int32, (S, HW), 0).astype(jnp.float32)
        neg = jnp.max(jnp.where(logits == mx, -ids, -float(S + 1)),
                      axis=0, keepdims=True)                   # first-max index
        spix_ref[...] = (-neg)[None].astype(jnp.int32)         # (1, 1, HW)

        # ---- softmax over S (sublane axis); HW stays lane-dense -------------
        e = jnp.exp(logits - mx)
        inv = pl.reciprocal(jnp.sum(e, axis=0, keepdims=True), approx=True)
        sims = e * inv                                         # (S, HW) f32
        sims_ref[...] = sims[None].astype(sims_ref.dtype)

        counts = jnp.sum(sims, axis=1, keepdims=True)          # (S, 1)
        sims_b = sims.astype(jnp.bfloat16)
        sims_n = (sims / (counts + 1e-6)).astype(jnp.bfloat16)

        # ---- superpixel conv: weighted pool / unpool (stand-in) -------------
        def sconv(f):
            pooled_t = jax.lax.dot_general(
                f.astype(jnp.bfloat16), sims_b, _NT_DIMS,
                preferred_element_type=jnp.float32)            # (D, S)
            return jnp.dot(pooled_t.astype(jnp.bfloat16), sims_n,
                           preferred_element_type=jnp.float32)  # (D, HW)

        ftrs = ftrs + sconv(ftrs)

        # ---- mid conv layers (empty for net_depth == 1), stay channels-major
        for d in range(n_mid):
            ftrs = conv3x3(ftrs, mid_refs[2 * d], mid_refs[2 * d + 1])
            ftrs = ftrs + sconv(ftrs)

        # ---- conv1 + residual (already (Cin, HW), lane-dense store) ----------
        deno = x + conv3x3(ftrs, w1_ref, b1_ref)               # (Cin, HW)
        deno_ref[...] = deno[None].astype(deno_ref.dtype)

    return kernel


# ----------------------------------------------------------------------------
# Host-side constants / parameters.
# ----------------------------------------------------------------------------
def _tap_masks(H, W):
    """(9, H*W) float32 border-validity masks for the 3x3 taps (0/1)."""
    hh, ww = np.meshgrid(np.arange(H), np.arange(W), indexing="ij")
    hh = hh.reshape(-1)
    ww = ww.reshape(-1)
    m = np.zeros((9, H * W), np.float32)
    t = 0
    for dy in range(3):
        for dx in range(3):
            oh, ow = dy - 1, dx - 1
            valid = ((hh + oh >= 0) & (hh + oh < H) &
                     (ww + ow >= 0) & (ww + ow < W))
            m[t] = valid
            t += 1
    return jnp.asarray(m)


def init_params(in_dim, dim, n_spix, net_depth=1, seed=0):
    """Deterministic synthetic params; conv weights stored PyTorch-style OIHW."""
    key = jax.random.PRNGKey(seed)
    ks = jax.random.split(key, 6 + 2 * max(net_depth - 1, 0))
    p = {
        "conv0_w": jax.random.normal(ks[0], (dim, in_dim, 3, 3), jnp.float32)
        * (1.0 / math.sqrt(9 * in_dim)),
        "conv0_b": 0.01 * jax.random.normal(ks[1], (dim,), jnp.float32),
        "conv1_w": jax.random.normal(ks[2], (in_dim, dim, 3, 3), jnp.float32)
        * (1.0 / math.sqrt(9 * dim)),
        "conv1_b": 0.01 * jax.random.normal(ks[3], (in_dim,), jnp.float32),
        # superpixel prototypes (stand-in for SuperpixelNetwork params)
        "protos": jax.random.normal(ks[4], (dim, n_spix), jnp.float32)
        * (1.0 / math.sqrt(dim)),
        "mid_w": [],
        "mid_b": [],
    }
    for d in range(net_depth - 1):
        p["mid_w"].append(
            jax.random.normal(ks[5 + 2 * d], (dim, dim, 3, 3), jnp.float32)
            * (1.0 / math.sqrt(9 * dim)))
        p["mid_b"].append(
            0.01 * jax.random.normal(ks[6 + 2 * d], (dim,), jnp.float32))
    return p


# ----------------------------------------------------------------------------
# Forward (mirrors SpixConvDenoiser.forward with spix=None).
# ----------------------------------------------------------------------------
def spix_conv_denoiser_forward(params, x_nchw, flows=None, fflow=None,
                               net_depth=1):
    del flows, fflow  # TODO(synk): flows unused — SuperpixelConv source unavailable.
    x = x_nchw.astype(jnp.float32)
    B, Cin, H, W = x.shape
    HW = H * W
    D = params["conv0_w"].shape[0]
    S = params["protos"].shape[1]

    # OIHW -> (cout, 9*cin) im2col weight, bf16 for the MXU (row (dy,dx,cin)).
    def im2col_w(w_oihw):
        o, i, kh, kw = w_oihw.shape
        return (jnp.transpose(w_oihw, (0, 2, 3, 1))
                .reshape(o, kh * kw * i).astype(jnp.bfloat16))

    x_chw = x.reshape(B, Cin, HW)                 # free reshape (no transpose)
    masks = _tap_masks(H, W)

    w0 = im2col_w(params["conv0_w"])
    b0 = params["conv0_b"].reshape(D, 1).astype(jnp.float32)
    w1 = im2col_w(params["conv1_w"])
    b1 = params["conv1_b"].reshape(Cin, 1).astype(jnp.float32)
    protos_t = params["protos"].T.astype(jnp.bfloat16)         # (S, D)

    inputs = [x_chw, masks, w0, b0, protos_t]
    in_specs = [
        pl.BlockSpec((1, Cin, HW), lambda b: (b, 0, 0)),
        pl.BlockSpec((9, HW), lambda b: (0, 0)),
        pl.BlockSpec((D, 9 * Cin), lambda b: (0, 0)),
        pl.BlockSpec((D, 1), lambda b: (0, 0)),
        pl.BlockSpec((S, D), lambda b: (0, 0)),
    ]
    for d in range(net_depth - 1):
        inputs += [im2col_w(params["mid_w"][d]),
                   params["mid_b"][d].reshape(D, 1).astype(jnp.float32)]
        in_specs += [pl.BlockSpec((D, 9 * D), lambda b: (0, 0)),
                     pl.BlockSpec((D, 1), lambda b: (0, 0))]
    inputs += [w1, b1]
    in_specs += [pl.BlockSpec((Cin, 9 * D), lambda b: (0, 0)),
                 pl.BlockSpec((Cin, 1), lambda b: (0, 0))]

    kernel = _make_fused_kernel(H, W, Cin, D, S, net_depth)

    deno_t, sims_t, spix = pl.pallas_call(
        kernel,
        out_shape=(
            jax.ShapeDtypeStruct((B, Cin, HW), jnp.float32),   # deno (Cin, HW)
            jax.ShapeDtypeStruct((B, S, HW), jnp.float32),     # sims (S, HW)
            jax.ShapeDtypeStruct((B, 1, HW), jnp.int32),       # spix
        ),
        grid=(B,),
        in_specs=in_specs,
        out_specs=(
            pl.BlockSpec((1, Cin, HW), lambda b: (b, 0, 0)),
            pl.BlockSpec((1, S, HW), lambda b: (b, 0, 0)),
            pl.BlockSpec((1, 1, HW), lambda b: (b, 0, 0)),
        ),
        compiler_params=pltpu.CompilerParams(
            dimension_semantics=("parallel",),
            vmem_limit_bytes=48 * 1024 * 1024),   # < v7x 64 MiB, > v5e default
    )(*inputs)

    # Free reshapes back to PyTorch conventions.
    deno = deno_t.reshape(B, Cin, H, W)
    sims = sims_t.reshape(B, S, H, W)
    spix_out = spix.reshape(B, H, W)
    return {"deno": deno, "sims": sims, "spix": spix_out}


if __name__ == "__main__":
    B, in_dim, dim, H, W, n_spix = 2, 4, 8, 16, 16, 16

    params = init_params(in_dim, dim, n_spix, net_depth=1, seed=0)

    key = jax.random.PRNGKey(0)
    kx, kf = jax.random.split(key)
    x = jax.random.normal(kx, (B, in_dim, H, W), jnp.float32)
    flows = jax.random.normal(kf, (B, 2, H, W), jnp.float32)

    fwd = jax.jit(lambda xx, ff: spix_conv_denoiser_forward(params, xx, ff))
    out = fwd(x, flows)
    jax.block_until_ready(out)

    assert out["deno"].shape == (B, in_dim, H, W)
    assert out["sims"].shape == (B, n_spix, H, W)
    assert out["spix"].shape == (B, H, W)
    assert out["spix"].dtype == jnp.int32
    assert bool(jnp.all(jnp.isfinite(out["deno"])))
    assert bool(jnp.all(jnp.isfinite(out["sims"])))
    print("KERNEL_OK")
</pallas_src>

<mosaic_0001>
module attributes {stable_mosaic.version = 11 : i64} {
  func.func @kernel(%arg0: i32, %arg1: memref<1x4x256xf32, #tpu.memory_space<vmem>>, %arg2: memref<9x256xf32, #tpu.memory_space<vmem>>, %arg3: memref<8x36xbf16, #tpu.memory_space<vmem>>, %arg4: memref<8x1xf32, #tpu.memory_space<vmem>>, %arg5: memref<16x8xbf16, #tpu.memory_space<vmem>>, %arg6: memref<4x72xbf16, #tpu.memory_space<vmem>>, %arg7: memref<4x1xf32, #tpu.memory_space<vmem>>, %arg8: memref<1x4x256xf32, #tpu.memory_space<vmem>>, %arg9: memref<1x16x256xf32, #tpu.memory_space<vmem>>, %arg10: memref<1x1x256xi32, #tpu.memory_space<vmem>>) attributes {dimension_semantics = [#tpu.dimension_semantics<parallel>], iteration_bounds = array<i64: 2>, scalar_prefetch = 0 : i64, scratch_operands = 0 : i64, tpu.core_type = #tpu.core_type<tc>, window_params = [{transform_indices = @transform_0, window_bounds = array<i64: 1, 4, 256>}, {pipeline_mode = #tpu.pipeline_mode<synchronous>, transform_indices = @transform_1, window_bounds = array<i64: 9, 256>}, {pipeline_mode = #tpu.pipeline_mode<synchronous>, transform_indices = @transform_2, window_bounds = array<i64: 8, 36>}, {pipeline_mode = #tpu.pipeline_mode<synchronous>, transform_indices = @transform_3, window_bounds = array<i64: 8, 1>}, {pipeline_mode = #tpu.pipeline_mode<synchronous>, transform_indices = @transform_4, window_bounds = array<i64: 16, 8>}, {pipeline_mode = #tpu.pipeline_mode<synchronous>, transform_indices = @transform_5, window_bounds = array<i64: 4, 72>}, {pipeline_mode = #tpu.pipeline_mode<synchronous>, transform_indices = @transform_6, window_bounds = array<i64: 4, 1>}, {transform_indices = @transform_7, window_bounds = array<i64: 1, 4, 256>}, {transform_indices = @transform_8, window_bounds = array<i64: 1, 16, 256>}, {transform_indices = @transform_9, window_bounds = array<i64: 1, 1, 256>}]} {
    %c0 = arith.constant 0 : index
    %c0_0 = arith.constant 0 : index
    %c0_1 = arith.constant 0 : index
    %0 = vector.load %arg1[%c0, %c0_0, %c0_1] : memref<1x4x256xf32, #tpu.memory_space<vmem>>, vector<1x4x256xf32>
    %1 = vector.shape_cast %0 : vector<1x4x256xf32> to vector<4x256xf32>
    %c17_i32 = arith.constant 17 : i32
    %2 = tpu.dynamic_rotate %1 by %c17_i32 dim 1 : vector<4x256xf32>, i32 -> vector<4x256xf32>
    %c0_2 = arith.constant 0 : index
    %c0_3 = arith.constant 0 : index
    %3 = vector.load %arg2[%c0_2, %c0_3] : memref<9x256xf32, #tpu.memory_space<vmem>>, vector<1x256xf32>
    %4 = vector.broadcast %3 : vector<1x256xf32> to vector<4x256xf32>
    %5 = arith.mulf %2, %4 : vector<4x256xf32>
    %c16_i32 = arith.constant 16 : i32
    %6 = tpu.dynamic_rotate %1 by %c16_i32 dim 1 : vector<4x256xf32>, i32 -> vector<4x256xf32>
    %c1 = arith.constant 1 : index
    %c0_4 = arith.constant 0 : index
    %7 = vector.load %arg2[%c1, %c0_4] : memref<9x256xf32, #tpu.memory_space<vmem>>, vector<1x256xf32>
    %8 = vector.broadcast %7 : vector<1x256xf32> to vector<4x256xf32>
    %9 = arith.mulf %6, %8 : vector<4x256xf32>
    %c15_i32 = arith.constant 15 : i32
    %10 = tpu.dynamic_rotate %1 by %c15_i32 dim 1 : vector<4x256xf32>, i32 -> vector<4x256xf32>
    %c2 = arith.constant 2 : index
    %c0_5 = arith.constant 0 : index
    %11 = vector.load %arg2[%c2, %c0_5] : memref<9x256xf32, #tpu.memory_space<vmem>>, vector<1x256xf32>
    %12 = vector.broadcast %11 : vector<1x256xf32> to vector<4x256xf32>
    %13 = arith.mulf %10, %12 : vector<4x256xf32>
    %c1_i32 = arith.constant 1 : i32
    %14 = tpu.dynamic_rotate %1 by %c1_i32 dim 1 : vector<4x256xf32>, i32 -> vector<4x256xf32>
    %c3 = arith.constant 3 : index
    %c0_6 = arith.constant 0 : index
    %15 = vector.load %arg2[%c3, %c0_6] : memref<9x256xf32, #tpu.memory_space<vmem>>, vector<1x256xf32>
    %16 = vector.broadcast %15 : vector<1x256xf32> to vector<4x256xf32>
    %17 = arith.mulf %14, %16 : vector<4x256xf32>
    %c255_i32 = arith.constant 255 : i32
    %18 = tpu.dynamic_rotate %1 by %c255_i32 dim 1 : vector<4x256xf32>, i32 -> vector<4x256xf32>
    %c5 = arith.constant 5 : index
    %c0_7 = arith.constant 0 : index
    %19 = vector.load %arg2[%c5, %c0_7] : memref<9x256xf32, #tpu.memory_space<vmem>>, vector<1x256xf32>
    %20 = vector.broadcast %19 : vector<1x256xf32> to vector<4x256xf32>
    %21 = arith.mulf %18, %20 : vector<4x256xf32>
    %c241_i32 = arith.constant 241 : i32
    %22 = tpu.dynamic_rotate %1 by %c241_i32 dim 1 : vector<4x256xf32>, i32 -> vector<4x256xf32>
    %c6 = arith.constant 6 : index
    %c0_8 = arith.constant 0 : index
    %23 = vector.load %arg2[%c6, %c0_8] : memref<9x256xf32, #tpu.memory_space<vmem>>, vector<1x256xf32>
    %24 = vector.broadcast %23 : vector<1x256xf32> to vector<4x256xf32>
    %25 = arith.mulf %22, %24 : vector<4x256xf32>
    %c240_i32 = arith.constant 240 : i32
    %26 = tpu.dynamic_rotate %1 by %c240_i32 dim 1 : vector<4x256xf32>, i32 -> vector<4x256xf32>
    %c7 = arith.constant 7 : index
    %c0_9 = arith.constant 0 : index
    %27 = vector.load %arg2[%c7, %c0_9] : memref<9x256xf32, #tpu.memory_space<vmem>>, vector<1x256xf32>
    %28 = vector.broadcast %27 : vector<1x256xf32> to vector<4x256xf32>
    %29 = arith.mulf %26, %28 : vector<4x256xf32>
    %c239_i32 = arith.constant 239 : i32
    %30 = tpu.dynamic_rotate %1 by %c239_i32 dim 1 : vector<4x256xf32>, i32 -> vector<4x256xf32>
    %c8 = arith.constant 8 : index
    %c0_10 = arith.constant 0 : index
    %31 = vector.load %arg2[%c8, %c0_10] : memref<9x256xf32, #tpu.memory_space<vmem>>, vector<1x256xf32>
    %32 = vector.broadcast %31 : vector<1x256xf32> to vector<4x256xf32>
    %33 = arith.mulf %30, %32 : vector<4x256xf32>
    %34 = tpu.concatenate %5, %9, %13, %17, %1, %21, %25, %29, %33 in 0 : vector<4x256xf32>, vector<4x256xf32>, vector<4x256xf32>, vector<4x256xf32>, vector<4x256xf32>, vector<4x256xf32>, vector<4x256xf32>, vector<4x256xf32>, vector<4x256xf32> -> vector<36x256xf32>
    %35 = arith.truncf %34 : vector<36x256xf32> to vector<36x256xbf16>
    %c0_11 = arith.constant 0 : index
    %c0_12 = arith.constant 0 : index
    %36 = vector.load %arg3[%c0_11, %c0_12] : memref<8x36xbf16, #tpu.memory_space<vmem>>, vector<8x36xbf16>
    %cst = arith.constant dense<0.000000e+00> : vector<8x256xf32>
    %37 = tpu.matmul %36, %35, %cst {dimension_numbers = #tpu.dot_dimension_numbers<[1], [0], [0], [1], [0, 0, 1, 1], [], []>} : vector<8x36xbf16>, vector<36x256xbf16>, vector<8x256xf32> -> vector<8x256xf32>
    %c0_13 = arith.constant 0 : index
    %c0_14 = arith.constant 0 : index
    %38 = vector.load %arg4[%c0_13, %c0_14] : memref<8x1xf32, #tpu.memory_space<vmem>>, vector<8x1xf32>
    %39 = vector.broadcast %38 : vector<8x1xf32> to vector<8x256xf32>
    %40 = arith.addf %37, %39 : vector<8x256xf32>
    %c0_15 = arith.constant 0 : index
    %c0_16 = arith.constant 0 : index
    %41 = vector.load %arg5[%c0_15, %c0_16] : memref<16x8xbf16, #tpu.memory_space<vmem>>, vector<16x8xbf16>
    %42 = arith.truncf %40 : vector<8x256xf32> to vector<8x256xbf16>
    %cst_17 = arith.constant dense<0.000000e+00> : vector<16x256xf32>
    %43 = tpu.matmul %41, %42, %cst_17 {dimension_numbers = #tpu.dot_dimension_numbers<[1], [0], [0], [1], [0, 0, 1, 1], [], []>} : vector<16x8xbf16>, vector<8x256xbf16>, vector<16x256xf32> -> vector<16x256xf32>
    %cst_18 = arith.constant dense<0xFF800000> : vector<256xf32>
    %44 = vector.multi_reduction <maximumf>, %43, %cst_18 [0] : vector<16x256xf32> to vector<256xf32>
    %45 = vector.shape_cast %44 : vector<256xf32> to vector<1x256xf32>
    %46 = tpu.iota {dimensions = array<i32: 0>} : vector<16x256xi32>
    %47 = arith.sitofp %46 : vector<16x256xi32> to vector<16x256xf32>
    %48 = vector.broadcast %45 : vector<1x256xf32> to vector<16x256xf32>
    %49 = arith.cmpf oeq, %43, %48 : vector<16x256xf32>
    %cst_19 = arith.constant 0.000000e+00 : f32
    %50 = vector.broadcast %cst_19 : f32 to vector<16x256xf32>
    %51 = arith.subf %50, %47 : vector<16x256xf32>
    %cst_20 = arith.constant -1.700000e+01 : f32
    %52 = vector.broadcast %cst_20 : f32 to vector<16x256xf32>
    %53 = arith.select %49, %51, %52 : vector<16x256xi1>, vector<16x256xf32>
    %cst_21 = arith.constant dense<0xFF800000> : vector<256xf32>
    %54 = vector.multi_reduction <maximumf>, %53, %cst_21 [0] : vector<16x256xf32> to vector<256xf32>
    %55 = vector.shape_cast %54 : vector<256xf32> to vector<1x256xf32>
    %cst_22 = arith.constant 0.000000e+00 : f32
    %56 = vector.broadcast %cst_22 : f32 to vector<1x256xf32>
    %57 = arith.subf %56, %55 : vector<1x256xf32>
    %58 = vector.shape_cast %57 : vector<1x256xf32> to vector<1x1x256xf32>
    %59 = arith.fptosi %58 : vector<1x1x256xf32> to vector<1x1x256xi32>
    %c0_23 = arith.constant 0 : index
    %c0_24 = arith.constant 0 : index
    %c0_25 = arith.constant 0 : index
    %60 = vector.load %arg10[%c0_23, %c0_24, %c0_25] : memref<1x1x256xi32, #tpu.memory_space<vmem>>, vector<1x1x256xi32>
    tpu.vector_store %arg10[%c0_23, %c0_24, %c0_25], %59 {strides = array<i32>} : memref<1x1x256xi32, #tpu.memory_space<vmem>>, vector<1x1x256xi32>,
    %61 = vector.broadcast %45 : vector<1x256xf32> to vector<16x256xf32>
    %62 = arith.subf %43, %61 : vector<16x256xf32>
    %63 = math.exp %62 : vector<16x256xf32>
    %cst_26 = arith.constant dense<0.000000e+00> : vector<256xf32>
    %64 = vector.multi_reduction <add>, %63, %cst_26 [0] : vector<16x256xf32> to vector<256xf32>
    %65 = vector.shape_cast %64 : vector<256xf32> to vector<1x256xf32>
    %66 = tpu.reciprocal %65 {approx = true} : vector<1x256xf32> -> vector<1x256xf32>
    %67 = vector.broadcast %66 : vector<1x256xf32> to vector<16x256xf32>
    %68 = arith.mulf %63, %67 : vector<16x256xf32>
    %69 = vector.shape_cast %68 : vector<16x256xf32> to vector<1x16x256xf32>
    %c0_27 = arith.constant 0 : index
    %c0_28 = arith.constant 0 : index
    %c0_29 = arith.constant 0 : index
    %70 = vector.load %arg9[%c0_27, %c0_28, %c0_29] : memref<1x16x256xf32, #tpu.memory_space<vmem>>, vector<1x16x256xf32>
    tpu.vector_store %arg9[%c0_27, %c0_28, %c0_29], %69 {strides = array<i32>} : memref<1x16x256xf32, #tpu.memory_space<vmem>>, vector<1x16x256xf32>,
    %cst_30 = arith.constant dense<0.000000e+00> : vector<16xf32>
    %71 = vector.multi_reduction <add>, %68, %cst_30 [1] : vector<16x256xf32> to vector<16xf32>
    %72 = vector.shape_cast %71 : vector<16xf32> to vector<16x1xf32>
    %73 = arith.truncf %68 : vector<16x256xf32> to vector<16x256xbf16>
    %cst_31 = arith.constant 9.99999997E-7 : f32
    %74 = vector.broadcast %cst_31 : f32 to vector<16x1xf32>
    %75 = arith.addf %72, %74 : vector<16x1xf32>
    %76 = vector.broadcast %75 : vector<16x1xf32> to vector<16x256xf32>
    %77 = arith.divf %68, %76 : vector<16x256xf32>
    %78 = arith.truncf %77 : vector<16x256xf32> to vector<16x256xbf16>
    %79 = arith.truncf %40 : vector<8x256xf32> to vector<8x256xbf16>
    %cst_32 = arith.constant dense<0.000000e+00> : vector<8x16xf32>
    %80 = tpu.matmul %79, %73, %cst_32 {dimension_numbers = #tpu.dot_dimension_numbers<[1], [1], [0], [0], [0, 0, 1, 0], [], []>} : vector<8x256xbf16>, vector<16x256xbf16>, vector<8x16xf32> -> vector<8x16xf32>
    %81 = arith.truncf %80 : vector<8x16xf32> to vector<8x16xbf16>
    %cst_33 = arith.constant dense<0.000000e+00> : vector<8x256xf32>
    %82 = tpu.matmul %81, %78, %cst_33 {dimension_numbers = #tpu.dot_dimension_numbers<[1], [0], [0], [1], [0, 0, 1, 1], [], []>} : vector<8x16xbf16>, vector<16x256xbf16>, vector<8x256xf32> -> vector<8x256xf32>
    %83 = arith.addf %40, %82 : vector<8x256xf32>
    %c17_i32_34 = arith.constant 17 : i32
    %84 = tpu.dynamic_rotate %83 by %c17_i32_34 dim 1 : vector<8x256xf32>, i32 -> vector<8x256xf32>
    %c0_35 = arith.constant 0 : index
    %c0_36 = arith.constant 0 : index
    %85 = vector.load %arg2[%c0_35, %c0_36] : memref<9x256xf32, #tpu.memory_space<vmem>>, vector<1x256xf32>
    %86 = vector.broadcast %85 : vector<1x256xf32> to vector<8x256xf32>
    %87 = arith.mulf %84, %86 : vector<8x256xf32>
    %c16_i32_37 = arith.constant 16 : i32
    %88 = tpu.dynamic_rotate %83 by %c16_i32_37 dim 1 : vector<8x256xf32>, i32 -> vector<8x256xf32>
    %c1_38 = arith.constant 1 : index
    %c0_39 = arith.constant 0 : index
    %89 = vector.load %arg2[%c1_38, %c0_39] : memref<9x256xf32, #tpu.memory_space<vmem>>, vector<1x256xf32>
    %90 = vector.broadcast %89 : vector<1x256xf32> to vector<8x256xf32>
    %91 = arith.mulf %88, %90 : vector<8x256xf32>
    %c15_i32_40 = arith.constant 15 : i32
    %92 = tpu.dynamic_rotate %83 by %c15_i32_40 dim 1 : vector<8x256xf32>, i32 -> vector<8x256xf32>
    %c2_41 = arith.constant 2 : index
    %c0_42 = arith.constant 0 : index
    %93 = vector.load %arg2[%c2_41, %c0_42] : memref<9x256xf32, #tpu.memory_space<vmem>>, vector<1x256xf32>
    %94 = vector.broadcast %93 : vector<1x256xf32> to vector<8x256xf32>
    %95 = arith.mulf %92, %94 : vector<8x256xf32>
    %c1_i32_43 = arith.constant 1 : i32
    %96 = tpu.dynamic_rotate %83 by %c1_i32_43 dim 1 : vector<8x256xf32>, i32 -> vector<8x256xf32>
    %c3_44 = arith.constant 3 : index
    %c0_45 = arith.constant 0 : index
    %97 = vector.load %arg2[%c3_44, %c0_45] : memref<9x256xf32, #tpu.memory_space<vmem>>, vector<1x256xf32>
    %98 = vector.broadcast %97 : vector<1x256xf32> to vector<8x256xf32>
    %99 = arith.mulf %96, %98 : vector<8x256xf32>
    %c255_i32_46 = arith.constant 255 : i32
    %100 = tpu.dynamic_rotate %83 by %c255_i32_46 dim 1 : vector<8x256xf32>, i32 -> vector<8x256xf32>
    %c5_47 = arith.constant 5 : index
    %c0_48 = arith.constant 0 : index
    %101 = vector.load %arg2[%c5_47, %c0_48] : memref<9x256xf32, #tpu.memory_space<vmem>>, vector<1x256xf32>
    %102 = vector.broadcast %101 : vector<1x256xf32> to vector<8x256xf32>
    %103 = arith.mulf %100, %102 : vector<8x256xf32>
    %c241_i32_49 = arith.constant 241 : i32
    %104 = tpu.dynamic_rotate %83 by %c241_i32_49 dim 1 : vector<8x256xf32>, i32 -> vector<8x256xf32>
    %c6_50 = arith.constant 6 : index
    %c0_51 = arith.constant 0 : index
    %105 = vector.load %arg2[%c6_50, %c0_51] : memref<9x256xf32, #tpu.memory_space<vmem>>, vector<1x256xf32>
    %106 = vector.broadcast %105 : vector<1x256xf32> to vector<8x256xf32>
    %107 = arith.mulf %104, %106 : vector<8x256xf32>
    %c240_i32_52 = arith.constant 240 : i32
    %108 = tpu.dynamic_rotate %83 by %c240_i32_52 dim 1 : vector<8x256xf32>, i32 -> vector<8x256xf32>
    %c7_53 = arith.constant 7 : index
    %c0_54 = arith.constant 0 : index
    %109 = vector.load %arg2[%c7_53, %c0_54] : memref<9x256xf32, #tpu.memory_space<vmem>>, vector<1x256xf32>
    %110 = vector.broadcast %109 : vector<1x256xf32> to vector<8x256xf32>
    %111 = arith.mulf %108, %110 : vector<8x256xf32>
    %c239_i32_55 = arith.constant 239 : i32
    %112 = tpu.dynamic_rotate %83 by %c239_i32_55 dim 1 : vector<8x256xf32>, i32 -> vector<8x256xf32>
    %c8_56 = arith.constant 8 : index
    %c0_57 = arith.constant 0 : index
    %113 = vector.load %arg2[%c8_56, %c0_57] : memref<9x256xf32, #tpu.memory_space<vmem>>, vector<1x256xf32>
    %114 = vector.broadcast %113 : vector<1x256xf32> to vector<8x256xf32>
    %115 = arith.mulf %112, %114 : vector<8x256xf32>
    %116 = tpu.concatenate %87, %91, %95, %99, %83, %103, %107, %111, %115 in 0 : vector<8x256xf32>, vector<8x256xf32>, vector<8x256xf32>, vector<8x256xf32>, vector<8x256xf32>, vector<8x256xf32>, vector<8x256xf32>, vector<8x256xf32>, vector<8x256xf32> -> vector<72x256xf32>
    %117 = arith.truncf %116 : vector<72x256xf32> to vector<72x256xbf16>
    %c0_58 = arith.constant 0 : index
    %c0_59 = arith.constant 0 : index
    %118 = vector.load %arg6[%c0_58, %c0_59] : memref<4x72xbf16, #tpu.memory_space<vmem>>, vector<4x72xbf16>
    %cst_60 = arith.constant dense<0.000000e+00> : vector<4x256xf32>
    %119 = tpu.matmul %118, %117, %cst_60 {dimension_numbers = #tpu.dot_dimension_numbers<[1], [0], [0], [1], [0, 0, 1, 1], [], []>} : vector<4x72xbf16>, vector<72x256xbf16>, vector<4x256xf32> -> vector<4x256xf32>
    %c0_61 = arith.constant 0 : index
    %c0_62 = arith.constant 0 : index
    %120 = vector.load %arg7[%c0_61, %c0_62] : memref<4x1xf32, #tpu.memory_space<vmem>>, vector<4x1xf32>
    %121 = vector.broadcast %120 : vector<4x1xf32> to vector<4x256xf32>
    %122 = arith.addf %119, %121 : vector<4x256xf32>
    %123 = arith.addf %1, %122 : vector<4x256xf32>
    %124 = vector.shape_cast %123 : vector<4x256xf32> to vector<1x4x256xf32>
    %c0_63 = arith.constant 0 : index
    %c0_64 = arith.constant 0 : index
    %c0_65 = arith.constant 0 : index
    %125 = vector.load %arg8[%c0_63, %c0_64, %c0_65] : memref<1x4x256xf32, #tpu.memory_space<vmem>>, vector<1x4x256xf32>
    tpu.vector_store %arg8[%c0_63, %c0_64, %c0_65], %124 {strides = array<i32>} : memref<1x4x256xf32, #tpu.memory_space<vmem>>, vector<1x4x256xf32>,
    return
  }
  func.func @transform_0(%arg0: i32) -> (i32, i32, i32) {
    %c0_i32 = arith.constant 0 : i32
    %c0_i32_0 = arith.constant 0 : i32
    %c0_i32_1 = arith.constant 0 : i32
    return %arg0, %c0_i32, %c0_i32_0 : i32, i32, i32
  }
  func.func @transform_1(%arg0: i32) -> (i32, i32) {
    %c0_i32 = arith.constant 0 : i32
    %c0_i32_0 = arith.constant 0 : i32
    %c0_i32_1 = arith.constant 0 : i32
    return %c0_i32, %c0_i32_0 : i32, i32
  }
  func.func @transform_2(%arg0: i32) -> (i32, i32) {
    %c0_i32 = arith.constant 0 : i32
    %c0_i32_0 = arith.constant 0 : i32
    %c0_i32_1 = arith.constant 0 : i32
    return %c0_i32, %c0_i32_0 : i32, i32
  }
  func.func @transform_3(%arg0: i32) -> (i32, i32) {
    %c0_i32 = arith.constant 0 : i32
    %c0_i32_0 = arith.constant 0 : i32
    %c0_i32_1 = arith.constant 0 : i32
    return %c0_i32, %c0_i32_0 : i32, i32
  }
  func.func @transform_4(%arg0: i32) -> (i32, i32) {
    %c0_i32 = arith.constant 0 : i32
    %c0_i32_0 = arith.constant 0 : i32
    %c0_i32_1 = arith.constant 0 : i32
    return %c0_i32, %c0_i32_0 : i32, i32
  }
  func.func @transform_5(%arg0: i32) -> (i32, i32) {
    %c0_i32 = arith.constant 0 : i32
    %c0_i32_0 = arith.constant 0 : i32
    %c0_i32_1 = arith.constant 0 : i32
    return %c0_i32, %c0_i32_0 : i32, i32
  }
  func.func @transform_6(%arg0: i32) -> (i32, i32) {
    %c0_i32 = arith.constant 0 : i32
    %c0_i32_0 = arith.constant 0 : i32
    %c0_i32_1 = arith.constant 0 : i32
    return %c0_i32, %c0_i32_0 : i32, i32
  }
  func.func @transform_7(%arg0: i32) -> (i32, i32, i32) {
    %c0_i32 = arith.constant 0 : i32
    %c0_i32_0 = arith.constant 0 : i32
    %c0_i32_1 = arith.constant 0 : i32
    return %arg0, %c0_i32, %c0_i32_0 : i32, i32, i32
  }
  func.func @transform_8(%arg0: i32) -> (i32, i32, i32) {
    %c0_i32 = arith.constant 0 : i32
    %c0_i32_0 = arith.constant 0 : i32
    %c0_i32_1 = arith.constant 0 : i32
    return %arg0, %c0_i32, %c0_i32_0 : i32, i32, i32
  }
  func.func @transform_9(%arg0: i32) -> (i32, i32, i32) {
    %c0_i32 = arith.constant 0 : i32
    %c0_i32_0 = arith.constant 0 : i32
    %c0_i32_1 = arith.constant 0 : i32
    return %arg0, %c0_i32, %c0_i32_0 : i32, i32, i32
  }
}

</mosaic_0001>

<bundles_post_ra>
// kernel: _lambda_.1
= control target key start
LH: loop header
LB: loop body
LE: loop exit
PB: predicated region body
PF: predicated region fallthrough
CT: control target
= control target key end

     0   :  { %s1408_s30 = smov 0   ;;  %s1733_s0 = inlined_call_operand.vmem [shape: f32[2,4,256], index: 0, kind: input, shape index: {}]   ;;  %s1734_s1 = inlined_call_operand.vmem [shape: f32[9,256], index: 1, kind: input, shape index: {}]   ;;  %s1735_s2 = inlined_call_operand.vmem [shape: bf16[8,36], index: 2, kind: input, shape index: {}]   ;;  %s1736_s3 = inlined_call_operand.vmem [shape: f32[8,1], index: 3, kind: input, shape index: {}]   ;;  %s1737_s4 = inlined_call_operand.vmem [shape: bf16[16,8], index: 4, kind: input, shape index: {}]   ;;  %s1738_s5 = inlined_call_operand.vmem [shape: bf16[4,72], index: 5, kind: input, shape index: {}]   ;;  %s1739_s6 = inlined_call_operand.vmem [shape: f32[4,1], index: 6, kind: input, shape index: {}]   ;;  %s1740_s7 = inlined_call_operand.vmem [shape: f32[2,4,256], index: 7, kind: output, shape index: {0}]   ;;  %s1741_s8 = inlined_call_operand.vmem [shape: f32[2,16,256], index: 8, kind: output, shape index: {1}]   ;;  %s1742_s9 = inlined_call_operand.vmem [shape: s32[2,1,256], index: 9, kind: output, shape index: {2}]  }
   0x1 LB: > { %s1260_s10 = sadd.s32 4294967295, %s1346_s30   ;;  %p1264_p0 = scmp.ge.s32.totalorder %s1346_s30, 1  ;;  %s1346_s30 = sphi %s1408_s30, %s20_s30  }
   0x2   : > { %p292_p1 = scmp.lt.s32.totalorder %s1346_s30, 3 }
   0x4   : > { %p293_p2 = pnand %p1264_p0, %p292_p1 }
   0x5   : > { %p337_p3 = scmp.lt.s32.totalorder (!%p293_p2), %s1260_s10, 1  ;;  %s1348_s15 = smov (!%p293_p2), 1   ;;  %v1354_v2 = vmov (!%p293_p2), 0   ;;  %v578_v3 = vld [vmem:[%s1736_s3] sm:$0xff] (!%p293_p2)  ;;  %v365_v4 = vlaneseq (!%p293_p2)  ;;  %vm562_vm4 = vcmask (!%p293_p2), 1043456   ;;  %vm588_vm9 = vcmask (!%p293_p2), 1041408  }
   0x6   : > { %296 = sbr.rel (%p293_p2) target bundleno = 1479 (0x5c7), region = 48  ;;  %s1349_s16 = smov (!%p293_p2), 16   ;;  %627 = vmatprep.mubr.bf16.mxu0 (!%p293_p2), %v1354_v2  ;;  %1321 = vset.pattern.permute.xlu0 (!%p293_p2), %v1354_v2  ;;  %v1274_v11 = vld [vmem:[%s1734_s1 + $0x3] ss:$8 sm:$0x3] (!%p293_p2)  ;;  %vm584_vm10 = vcmask (!%p293_p2), 293888  }
   0x7   : > { %s1350_s17 = smov (!%p293_p2), 17   ;;  %s1351_s18 = smov (!%p293_p2), 15   ;;  %v1468_v5 = vshrl.u32 (!%p293_p2), %v365_v4, 7  ;;  %v1471_v6 = vand.u32 (!%p293_p2), 127, %v365_v4  ;;  %vm645_vm11 = vcmask (!%p293_p2), 64512  }
   0x8   : > { %s1352_s19 = smov (!%p293_p2), 127   ;;  %s1353_s20 = smov (!%p293_p2), 112   ;;  %v1272_v12 = vld [vmem:[%s1734_s1 + $0x1] ss:$8 sm:$0x3] (!%p293_p2) }
   0x9   : > { %s1355_s21 = smov (!%p293_p2), 113   ;;  %s1356_s22 = smov (!%p293_p2), 111   ;;  %v1474_v9 = vsub.s32 (!%p293_p2), 0, %v1468_v5  ;;  %v1477_v10 = vsub.s32 (!%p293_p2), 1, %v1468_v5  ;;  %vm432_vm0 = vcmp.lt.s32.totalorder (!%p293_p2), %v1471_v6, 1  ;;  %vm388_vm1 = vcmp.lt.s32.totalorder (!%p293_p2), %v1471_v6, 16 }
   0xa   : > { %v370_v17 = vld [vmem:[%s1734_s1] ss:$8 sm:$0x3] (!%p293_p2)  ;;  %v1273_v22 = vld [vmem:[%s1734_s1 + $0x2] ss:$8 sm:$0x3] (!%p293_p2) }
   0xb   : > { %v441_v15 = vrot.slane (!%p293_p2), %v1274_v11, %v1474_v9  ;;  %v445_v16 = vrot.slane (!%p293_p2), %v1274_v11, %v1477_v10  ;;  %v397_v20 = vrot.slane (!%p293_p2), %v1272_v12, %v1474_v9  ;;  %v401_v21 = vrot.slane (!%p293_p2), %v1272_v12, %v1477_v10  ;;  %v1275_v41 = vld [vmem:[%s1734_s1 + $0x5] ss:$8 sm:$0x3] (!%p293_p2)  ;;  %v1277_v52 = vld [vmem:[%s1734_s1 + $0x7] ss:$8 sm:$0x3] (!%p293_p2) }
   0xc   : > { %vm367_vm2 = vcmp.lt.s32.totalorder (!%p293_p2), %v1471_v6, 17  ;;  %v375_v23 = vrot.slane (!%p293_p2), %v370_v17, %v1474_v9  ;;  %v379_v24 = vrot.slane (!%p293_p2), %v370_v17, %v1477_v10  ;;  %vm410_vm3 = vcmp.lt.s32.totalorder (!%p293_p2), %v1471_v6, 15 }
   0xd   : > { %s1744_s10 = smov (!%p337_p3, %s1260_s10), 1  ;;  %v419_v33 = vrot.slane %v1273_v22, %v1474_v9  ;;  %v423_v34 = vrot.slane %v1273_v22, %v1477_v10  ;;  %vm454_vm5 = vcmp.lt.s32.totalorder %v1471_v6, 127  ;;  %v463_v50 = vrot.slane %v1275_v41, %v1474_v9 }
   0xe   : > { %s1296_s11 = sshll.u32 %s1744_s10, 3  ;;  %v467_v51 = vrot.slane %v1275_v41, %v1477_v10  ;;  %vm498_vm6 = vcmp.lt.s32.totalorder %v1471_v6, 112  ;;  %v507_v63 = vrot.slane %v1277_v52, %v1474_v9  ;;  %vm476_vm7 = vcmp.lt.s32.totalorder %v1471_v6, 113  ;;  %s1271_s25 = sshll.u32 %s1744_s10, 1 }
   0xf   : > { %s341_s14 = scalar_lea.vmem %s1733_s0, %s1296_s11  ;;  %vm520_vm8 = vcmp.lt.s32.totalorder %v1471_v6, 111  ;;  %s355_s28 = scalar_lea.vmem %s1742_s9, %s1271_s25 }
  0x10   : > { %v1424_v0 = vld [vmem:[%s341_s14] sm:$0xff]  ;;  %s1298_s29 = sshll.u32 %s1744_s10, 5 }
  0x11   : > { %428 = vrot.lane.b32.xlu1 %v1424_v0, %s1348_s15  ;;  %384 = vrot.lane.b32.xlu0 %v1424_v0, %s1349_s16  ;;  %v1432_v1 = vcombine.high %v1424_v0, %v1424_v0  ;;  %s351_s14 = scalar_lea.vmem %s1741_s8, %s1298_s29 }
  0x15   : > { %361 = vrot.lane.b32.xlu0 %v1424_v0, %s1350_s17  ;;  %430 = vrot.lane.b32.xlu1 %v1432_v1, %s1348_s15 }
  0x19   : > { %363 = vrot.lane.b32.xlu1 %v1432_v1, %s1350_s17  ;;  %386 = vrot.lane.b32.xlu0 %v1432_v1, %s1349_s16 }
  0x1d   : > { %408 = vrot.lane.b32.xlu1 %v1432_v1, %s1351_s18  ;;  %406 = vrot.lane.b32.xlu0 %v1424_v0, %s1351_s18 }
  0x21   : > { %452 = vrot.lane.b32.xlu1 %v1432_v1, %s1352_s19  ;;  %450 = vrot.lane.b32.xlu0 %v1424_v0, %s1352_s19 }
  0x25   : > { %496 = vrot.lane.b32.xlu1 %v1432_v1, %s1353_s20  ;;  %494 = vrot.lane.b32.xlu0 %v1424_v0, %s1353_s20 }
  0x29   : > { %474 = vrot.lane.b32.xlu1 %v1432_v1, %s1355_s21  ;;  %472 = vrot.lane.b32.xlu0 %v1424_v0, %s1355_s21 }
  0x2d   : > { %518 = vrot.lane.b32.xlu1 %v1432_v1, %s1356_s22  ;;  %516 = vrot.lane.b32.xlu0 %v1424_v0, %s1356_s22 }
  0x31   : > { %581 = vperm.xlu0 %1321, %v578_v3   ;;  %v511_v3 = vrot.slane %v1277_v52, %v1477_v10 }
  0x83   : > { %v429_v7 = vpop.permute.xlu1 %428  ;;  %v385_v8 = vpop.permute.xlu0 %384 }
  0x87   : > { %v362_v13 = vpop.permute.xlu0 %361  ;;  %v431_v14 = vpop.permute.xlu1 %430 }
  0x88   : > { %v433_v18 = vsel %vm432_vm0, %v429_v7, %v431_v14  ;;  %v434_v19 = vsel %vm432_vm0, %v431_v14, %v429_v7  ;;  %v1276_v7 = vld [vmem:[%s1734_s1 + $0x6] ss:$8 sm:$0x3] }
  0x89   : > { %v448_v27 = vmul.f32 %v441_v15, %v434_v19  ;;  %v449_v28 = vmul.f32 %v445_v16, %v433_v18  ;;  %v485_v18 = vrot.slane %v1276_v7, %v1474_v9  ;;  %v489_v19 = vrot.slane %v1276_v7, %v1477_v10 }
  0x8b   : > { %v364_v25 = vpop.permute.xlu1 %363  ;;  %v387_v26 = vpop.permute.xlu0 %386  ;;  %v546_v42 = vrot.slane %v448_v27, 4  ;;  %v547_v43 = vrot.slane %v449_v28, 4 }
  0x8c   : > { %v389_v29 = vsel %vm388_vm1, %v385_v8, %v387_v26  ;;  %v390_v30 = vsel %vm388_vm1, %v387_v26, %v385_v8  ;;  %v368_v35 = vsel %vm367_vm2, %v362_v13, %v364_v25  ;;  %v369_v36 = vsel %vm367_vm2, %v364_v25, %v362_v13 }
  0x8d   : > { %v404_v31 = vmul.f32 %v397_v20, %v390_v30  ;;  %v405_v32 = vmul.f32 %v401_v21, %v389_v29  ;;  %v382_v46 = vmul.f32 %v375_v23, %v369_v36  ;;  %v383_v47 = vmul.f32 %v379_v24, %v368_v35  ;;  %v1278_v20 = vld [vmem:[%s1734_s1 + $0x10] ss:$8 sm:$0x3] }
  0x8e   : > { %v529_v27 = vrot.slane %v1278_v20, %v1474_v9  ;;  %v533_v28 = vrot.slane %v1278_v20, %v1477_v10 }
  0x8f   : > { %v540_v37 = vrot.slane %v404_v31, 4  ;;  %v541_v38 = vrot.slane %v405_v32, 4  ;;  %v409_v39 = vpop.permute.xlu1 %408  ;;  %v407_v40 = vpop.permute.xlu0 %406 }
  0x90   : > { %v411_v44 = vsel %vm410_vm3, %v407_v40, %v409_v39  ;;  %v412_v45 = vsel %vm410_vm3, %v409_v39, %v407_v40 }
  0x91   : > { %v426_v48 = vmul.f32 %v419_v33, %v412_v45  ;;  %v427_v49 = vmul.f32 %v423_v34, %v411_v44  ;;  %v564_v55 = vsel %vm562_vm4, %v383_v47, %v541_v38  ;;  %v563_v57 = vsel %vm562_vm4, %v382_v46, %v540_v37  ;;  %v577_v47 = vld [vmem:[%s1735_s2] sm:$0xf] }
  0x93   : > { %v453_v53 = vpop.permute.xlu1 %452  ;;  %v451_v54 = vpop.permute.xlu0 %450  ;;  %v566_v56 = vsel %vm562_vm4, %v427_v49, %v547_v43  ;;  %v565_v58 = vsel %vm562_vm4, %v426_v48, %v546_v42 }
  0x94   : > { %v455_v59 = vsel %vm454_vm5, %v451_v54, %v453_v53  ;;  %v456_v60 = vsel %vm454_vm5, %v453_v53, %v451_v54  ;;  %v572_v61 = vpack.c.bf16 %v566_v56, %v564_v55  ;;  %v571_v62 = vpack.c.bf16 %v565_v58, %v563_v57  ;;  %v1323_v58 = vld [vmem:[%s1737_s4] sm:$0xff]  }
  0x95   : > { %v470_v8 = vmul.f32 %v463_v50, %v455_v59  ;;  %v471_v11 = vmul.f32 %v467_v51, %v456_v60 }
  0x96   : > { %595 = vmatprep.subr.bf16.mxu0 %v572_v61 }
  0x97   : > { %v497_v12 = vpop.permute.xlu1 %496  ;;  %596 = vmatpush1.bf16.msra.mxu0 %v571_v62  ;;  %v495_v13 = vpop.permute.xlu0 %494  ;;  %v552_v21 = vrot.slane %v470_v8, 4  ;;  %v553_v22 = vrot.slane %v471_v11, 4  ;;  %v714_v8 = vadd.s32 8, %v1468_v5 }
  0x98   : > { %v499_v14 = vsel %vm498_vm6, %v495_v13, %v497_v12  ;;  %v500_v15 = vsel %vm498_vm6, %v497_v12, %v495_v13 }
  0x99   : > { %v514_v16 = vmul.f32 %v507_v63, %v499_v14  ;;  %v515_v17 = vmul.f32 %v511_v3, %v500_v15  ;;  %v568_v35 = vsel %vm562_vm4, %v1432_v1, %v553_v22  ;;  %v567_v37 = vsel %vm562_vm4, %v1424_v0, %v552_v21 }
  0x9a   : > { %v715_v15 = vcvt.s32.f32 %v1468_v5 }
  0x9b   : > { %v475_v23 = vpop.permute.xlu1 %474  ;;  %v473_v24 = vpop.permute.xlu0 %472  ;;  %v558_v29 = vrot.slane %v514_v16, 4  ;;  %v559_v30 = vrot.slane %v515_v17, 4  ;;  %v716_v16 = vcvt.s32.f32 %v714_v8 }
  0x9c   : > { %v477_v25 = vsel %vm476_vm7, %v473_v24, %v475_v23  ;;  %v478_v26 = vsel %vm476_vm7, %v475_v23, %v473_v24  ;;  %v721_v21 = vsub.f32 0.0, %v715_v15 }
  0x9d   : > { %v492_v31 = vmul.f32 %v485_v18, %v477_v25  ;;  %v493_v32 = vmul.f32 %v489_v19, %v478_v26  ;;  %v722_v22 = vsub.f32 0.0, %v716_v16 }
  0x9f   : > { %v519_v33 = vpop.permute.xlu1 %518  ;;  %v517_v34 = vpop.permute.xlu0 %516  ;;  %v570_v36 = vsel %vm562_vm4, %v493_v32, %v559_v30  ;;  %v569_v38 = vsel %vm562_vm4, %v492_v31, %v558_v29 }
  0xa0   : > { %v521_v39 = vsel %vm520_vm8, %v517_v34, %v519_v33  ;;  %v522_v40 = vsel %vm520_vm8, %v519_v33, %v517_v34  ;;  %v574_v41 = vpack.c.bf16 %v570_v36, %v568_v35  ;;  %v573_v42 = vpack.c.bf16 %v569_v38, %v567_v37 }
  0xa1   : > { %v536_v43 = vmul.f32 %v529_v27, %v521_v39  ;;  %v537_v44 = vmul.f32 %v533_v28, %v522_v40 }
  0xa2   : > { %597 = vmatprep.subr.bf16.mxu0 %v574_v41 }
  0xa3   : > { %v575_v1 = vpack.c.bf16 %v536_v43, %v536_v43  ;;  %v576_v45 = vpack.c.bf16 %v537_v44, %v537_v44  ;;  %598 = vmatpush1.bf16.msra.mxu0 %v573_v42 }
  0xa5   : > { %1279 = vmatprep.subr.msk.bf16.mxu0 %vm588_vm9, %v576_v45  ;;  %v590_v46 = vsel %vm588_vm9, %v575_v1, 0  ;;  %vm762_vm9 = vcmp.lt.s32.totalorder %v365_v4, 256 }
  0xa7   : > { %600 = vmatpush1.bf16.msra.mxu0 %v590_v46 }
  0xaa   : > { %1280 = vmatmul.mubr.msk.bf16.vlgmr.msra.gmra.mrb[0].mxu0 %vm584_vm10, %v577_v47  ;;  %vm860_vm10 = vcmask 130048  }
  0xab   : > { %687 = vmatprep.mubr.bf16.mxu0 %v1354_v2 }
  0xb0   : > { %v582_v48 = vpop.permute.xlu0 %581 }
 0x17d   : > { %v629_v49 = vpop.f32.mrb[0].mxu0 }
 0x17e   : > { %v1573_v50 = vadd.f32 %v629_v49, %v582_v48  ;;  %v631_v51 = vpop.f32.mrb[1].mxu0 }
 0x17f   : > { %v1575_v52 = vadd.f32 %v631_v51, %v582_v48  ;;  %v633_v53 = vpop.f32.mrb[2].mxu0 }
 0x180   : > { %v1579_v54 = vpack.c.bf16 %v1573_v50, %v1573_v50  ;;  %v634_v55 = vpop.f32.mrb[3].mxu0  ;;  %v1357_v53 = vmov 1966171168  }
 0x181   : > { %v639_v56 = vpack.c.bf16 %v1575_v52, %v1575_v52  ;;  %v747_v55 = vunpack.c.l.s4 %v1357_v53 }
 0x182   : > { %v650_v57 = vsel %vm562_vm4, %v1579_v54, 0 }
 0x183   : > { %1282 = vmatprep.subr.msk.bf16.mxu0 %vm562_vm4, %v639_v56  ;;  %851 = vmatprep.mubr.bf16.mxu1 %v639_v56 }
 0x184   : > { %656 = vmatpush1.bf16.msra.mxu0 %v650_v57 }
 0x187   : > { %1283 = vmatmul.mubr.msk.bf16.vlgmr.msra.gmra.mrb[4].mxu0 %vm645_vm11, %v1323_v58 }
 0x188   : > { %896 = vmatprep.mubr.bf16.mxu0 %v1354_v2 }
 0x25a   : > { %v689_v59 = vpop.f32.mrb[4].mxu0 }
 0x25b   : > { %v691_v60 = vpop.f32.mrb[5].mxu0 }
 0x25c   : > { %v693_v61 = vpop.f32.mrb[6].mxu0 }
 0x25d   : > { %v698_v62 = vmax.f32 %v689_v59, %v693_v61  ;;  %v695_v63 = vpop.f32.mrb[7].mxu0 }
 0x25e   : > { %v705_v3 = vmax.f32 %v691_v60, %v695_v63 }
 0x25f   : > { %v699_v7 = vrot.slane %v698_v62, 4 }
 0x260   : > { %v706_v11 = vrot.slane %v705_v3, 4 }
 0x261   : > { %v700_v12 = vmax.f32 %v698_v62, %v699_v7  ;;  %v748_v7 = vunpack.c.0.s8 %v747_v55 }
 0x262   : > { %v707_v13 = vmax.f32 %v705_v3, %v706_v11 }
 0x263   : > { %v701_v14 = vrot.slane %v700_v12, 2 }
 0x264   : > { %v708_v17 = vrot.slane %v707_v13, 2 }
 0x265   : > { %v702_v18 = vmax.f32 %v700_v12, %v701_v14 }
 0x266   : > { %v709_v19 = vmax.f32 %v707_v13, %v708_v17  ;;  %v751_v17 = vsub.s32 %v748_v7, %v1468_v5 }
 0x267   : > { %v703_v20 = vrot.slane %v702_v18, 1 }
 0x268   : > { %v710_v23 = vrot.slane %v709_v19, 1 }
 0x269   : > { %v704_v24 = vmax.f32 %v702_v18, %v703_v20 }
 0x26a   : > { %v711_v25 = vmax.f32 %v709_v19, %v710_v23 }
 0x26b   : > { %vm717_vm12 = vcmp.eq.f32.partialorder %v689_v59, %v704_v24  ;;  %vm719_vm13 = vcmp.eq.f32.partialorder %v693_v61, %v704_v24  ;;  %v765_v26 = vsub.f32 %v689_v59, %v704_v24  ;;  %v767_v27 = vsub.f32 %v693_v61, %v704_v24 }
 0x26c   : > { %v723_v28 = vsel %vm717_vm12, %v721_v21, -17.0  ;;  %v725_v29 = vsel %vm719_vm13, %v722_v22, -17.0  ;;  %vm718_vm14 = vcmp.eq.f32.partialorder %v691_v60, %v711_v25  ;;  %vm720_vm15 = vcmp.eq.f32.partialorder %v695_v63, %v711_v25 }
 0x26d   : > { %v727_v30 = vmax.f32 %v723_v28, %v725_v29  ;;  %v769_v31 = vmul.f32 1.442695, %v765_v26  ;;  %v773_v32 = vmul.f32 1.442695, %v767_v27  ;;  %v724_v33 = vsel %vm718_vm14, %v721_v21, -17.0 }
 0x26e   : > { %v726_v34 = vsel %vm720_vm15, %v722_v22, -17.0  ;;  %v766_v35 = vsub.f32 %v691_v60, %v711_v25  ;;  %v768_v36 = vsub.f32 %v695_v63, %v711_v25 }
 0x26f   : > { %v728_v37 = vrot.slane %v727_v30, 4  ;;  %1324 = vpow2.f32 %v769_v31  ;;  %v734_v38 = vmax.f32 %v724_v33, %v726_v34 }
 0x270   : > { %1326 = vpow2.f32 %v773_v32  ;;  %v771_v39 = vmul.f32 1.442695, %v766_v35  ;;  %v775_v40 = vmul.f32 1.442695, %v768_v36 }
 0x271   : > { %v729_v41 = vmax.f32 %v727_v30, %v728_v37  ;;  %v735_v42 = vrot.slane %v734_v38, 4 }
 0x272   : > { %1328 = vpow2.f32 %v771_v39 }
 0x273   : > { %v730_v43 = vrot.slane %v729_v41, 2  ;;  %v736_v44 = vmax.f32 %v734_v38, %v735_v42  ;;  %1330 = vpow2.f32 %v775_v40 }
 0x275   : > { %v731_v1 = vmax.f32 %v729_v41, %v730_v43  ;;  %v737_v45 = vrot.slane %v736_v44, 2 }
 0x277   : > { %v732_v46 = vrot.slane %v731_v1, 1  ;;  %v738_v47 = vmax.f32 %v736_v44, %v737_v45 }
 0x279   : > { %v1325_v48 = vpop.eup %1324  ;;  %v733_v49 = vmax.f32 %v731_v1, %v732_v46  ;;  %v739_v51 = vrot.slane %v738_v47, 1 }
 0x27a   : > { %v1327_v56 = vpop.eup %1326 }
 0x27b   : > { %v741_v57 = vsub.f32 0.0, %v733_v49  ;;  %v777_v58 = vadd.f32 %v1327_v56, %v1325_v48  ;;  %v740_v59 = vmax.f32 %v738_v47, %v739_v51 }
 0x27c   : > { %v1329_v60 = vpop.eup %1328 }
 0x27d   : > { %v1331_v61 = vpop.eup %1330  ;;  %v1299_v62 = vtrunc.f32 %v741_v57  ;;  %v778_v63 = vrot.slane %v777_v58, 4  ;;  %v742_v3 = vsub.f32 0.0, %v740_v59 }
 0x27e   : > { %v784_v8 = vadd.f32 %v1331_v61, %v1329_v60 }
 0x27f   : > { %v1300_v11 = vcvt.f32.s32 %v1299_v62  ;;  %v779_v12 = vadd.f32 %v778_v63, %v777_v58  ;;  %v1301_v13 = vtrunc.f32 %v742_v3  ;;  %v913_v62 = vld [vmem:[%s1734_s1] ss:$8 sm:$0x3] }
 0x280   : > { %v785_v14 = vrot.slane %v784_v8, 4 }
 0x281   : > { %v780_v15 = vrot.slane %v779_v12, 2  ;;  %v1302_v16 = vcvt.f32.s32 %v1301_v13 }
 0x282   : > { %v786_v18 = vadd.f32 %v785_v14, %v784_v8 }
 0x283   : > { %v781_v19 = vadd.f32 %v780_v15, %v779_v12  ;;  %v745_v20 = vcombine.low %v1300_v11, %v1302_v16  ;;  %v918_v11 = vrot.slane %v913_v62, %v1474_v9  ;;  %v922_v12 = vrot.slane %v913_v62, %v1477_v10 }
 0x284   : > { %v787_v21 = vrot.slane %v786_v18, 2 }
 0x285   : > { %v782_v22 = vrot.slane %v781_v19, 1  ;;  %v752_v23 = vrot.slane %v745_v20, %v751_v17 }
 0x286   : > { %v788_v24 = vadd.f32 %v787_v21, %v786_v18 }
 0x287   : > { %v759_v25 = vrot.slane %v752_v23, %v751_v17  ;;  %v783_v26 = vadd.f32 %v782_v22, %v781_v19  ;;  %v1286_v23 = vld [vmem:[%s1734_s1 + $0x2] ss:$8 sm:$0x3] }
 0x288   : > { %v789_v27 = vrot.slane %v788_v24, 1 }
 0x289   : > { %764 = vst.msk [vmem:[%s355_s28] sm:$0x3] %vm762_vm9, %v759_v25  ;;  %1332 = vrcp.f32 %v783_v26 }
 0x28a   : > { %v790_v5 = vadd.f32 %v789_v27, %v788_v24  ;;  %v1287_v24 = vld [vmem:[%s1734_s1 + $0x3] ss:$8 sm:$0x3] }
 0x28c   : > { %1334 = vrcp.f32 %v790_v5  ;;  %v958_v5 = vrot.slane %v1286_v23, %v1474_v9 }
 0x293   : > { %v1333_v28 = vpop.eup %1332 }
 0x294   : > { %v795_v29 = vmul.f32 %v1333_v28, %v1327_v56  ;;  %v793_v30 = vmul.f32 %v1333_v28, %v1325_v48  ;;  %v962_v28 = vrot.slane %v1286_v23, %v1477_v10 }
 0x296   : > { %v1335_v31 = vpop.eup %1334  ;;  %799 = vst [vmem:[%s351_s14 + $0x10] sm:$0xff] %v795_v29  ;;  %797 = vst [vmem:[%s351_s14] sm:$0xff] %v793_v30  ;;  %v807_v36 = vpack.c.bf16 %v795_v29, %v793_v30 }
 0x297   : > { %v796_v4 = vmul.f32 %v1335_v31, %v1331_v61  ;;  %v794_v32 = vmul.f32 %v1335_v31, %v1329_v60  ;;  %v1285_v61 = vld [vmem:[%s1734_s1 + $0x1] ss:$8 sm:$0x3]  ;;  %v982_v31 = vrot.slane %v1287_v24, %v1477_v10 }
 0x298   : > { %v938_v7 = vrot.slane %v1285_v61, %v1474_v9  ;;  %v942_v8 = vrot.slane %v1285_v61, %v1477_v10  ;;  %v1291_v61 = vld [vmem:[%s1734_s1 + $0x10] ss:$8 sm:$0x3] }
 0x299   : > { %v804_v33 = vadd.f32 %v796_v4, %v795_v29  ;;  %800 = vst [vmem:[%s351_s14 + $0x18] sm:$0xff] %v796_v4  ;;  %798 = vst [vmem:[%s351_s14 + $0x8] sm:$0xff] %v794_v32  ;;  %v808_v34 = vpack.c.bf16 %v796_v4, %v794_v32  ;;  %v801_v35 = vadd.f32 %v794_v32, %v793_v30 }
 0x29b   : > { %805 = vadd.xlane.f32.xlu0 %v804_v33  ;;  %819 = vmatprep.subr.bf16.mxu1 %v808_v34 }
 0x29c   : > { %802 = vadd.xlane.f32.xlu1 %v801_v35  ;;  %820 = vmatpush1.bf16.xpose.msra.mxu1 %v807_v36 }
 0x2a3   : > { %852 = vmatmul.mubr.bf16.vlgmr.msra.gmra.mrb[0].mxu1 %v1579_v54 }
 0x2a4   : > { %1126 = vmatprep.mubr.bf16.mxu1 %v1354_v2 }
 0x328   : > { %v806_v37 = vpop.xlane.xlu0 %805 }
 0x329   : > { %v810_v38 = vadd.f32 1e-06, %v806_v37  ;;  %v803_v39 = vpop.xlane.xlu1 %802 }
 0x32a   : > { %v809_v40 = vadd.f32 1e-06, %v803_v39 }
 0x32b   : > { %1336 = vrcp.f32 %v810_v38 }
 0x32c   : > { %1338 = vrcp.f32 %v809_v40 }
 0x335   : > { %v1337_v41 = vpop.eup %1336 }
 0x336   : > { %v1339_v42 = vpop.eup %1338  ;;  %v816_v43 = vmul.f32 %v1337_v41, %v796_v4  ;;  %v815_v44 = vmul.f32 %v1337_v41, %v795_v29  ;;  %v1288_v4 = vld [vmem:[%s1734_s1 + $0x5] ss:$8 sm:$0x3] }
 0x337   : > { %v813_v1 = vmul.f32 %v1339_v42, %v794_v32  ;;  %v812_v45 = vmul.f32 %v1339_v42, %v793_v30  ;;  %v978_v30 = vrot.slane %v1287_v24, %v1474_v9  ;;  %v998_v37 = vrot.slane %v1288_v4, %v1474_v9  ;;  %v1077_v24 = vld [vmem:[%s1738_s5] sm:$0x3] }
 0x338   : > { %v1002_v38 = vrot.slane %v1288_v4, %v1477_v10 }
 0x339   : > { %v818_v46 = vpack.c.bf16 %v816_v43, %v813_v1  ;;  %v817_v47 = vpack.c.bf16 %v815_v44, %v812_v45 }
 0x33b   : > { %864 = vmatprep.subr.bf16.mxu0 %v818_v46 }
 0x33c   : > { %865 = vmatpush1.bf16.msra.mxu0 %v817_v47 }
 0x376   : > { %v853_v48 = vpop.f32.mrb[0].mxu1 }
 0x377   : > { %v859_v54 = vpack.c.bf16 %v853_v48, %v853_v48  ;;  %v855_v2 = vpop.f32.mrb[1].mxu1 }
 0x378   : > { %v856_v49 = vpop.f32.mrb[2].mxu1  ;;  %v1289_v2 = vld [vmem:[%s1734_s1 + $0x6] ss:$8 sm:$0x3] }
 0x379   : > { %v857_v51 = vpop.f32.mrb[3].mxu1  ;;  %1284 = vmatmul.mubr.msk.bf16.vlgmr.msra.gmra.mrb[8].mxu0 %vm860_vm10, %v859_v54  ;;  %v1290_v49 = vld [vmem:[%s1734_s1 + $0x7] ss:$8 sm:$0x3] }
 0x44c   : > { %v898_v53 = vpop.f32.mrb[8].mxu0 }
 0x44d   : > { %v1605_v55 = vadd.f32 %v898_v53, %v1573_v50  ;;  %v900_v56 = vpop.f32.mrb[9].mxu0  ;;  %v1078_v50 = vld [vmem:[%s1739_s6] sm:$0xf] }
 0x44e   : > { %v902_v57 = vpop.f32.mrb[10].mxu0  ;;  %v1616_v59 = vadd.f32 %v900_v56, %v1575_v52 }
 0x44f   : > { %947 = vrot.lane.b32.xlu0 %v1605_v55, %s1351_s18  ;;  %907 = vrot.lane.b32.xlu1 %v1605_v55, %s1350_s17  ;;  %v903_v58 = vpop.f32.mrb[11].mxu0 }
 0x450   : > { %v1018_v58 = vrot.slane %v1289_v2, %v1474_v9 }
 0x453   : > { %967 = vrot.lane.b32.xlu0 %v1605_v55, %s1348_s15  ;;  %927 = vrot.lane.b32.xlu1 %v1605_v55, %s1349_s16 }
 0x457   : > { %929 = vrot.lane.b32.xlu1 %v1616_v59, %s1349_s16  ;;  %909 = vrot.lane.b32.xlu0 %v1616_v59, %s1350_s17 }
 0x45b   : > { %949 = vrot.lane.b32.xlu1 %v1616_v59, %s1351_s18  ;;  %987 = vrot.lane.b32.xlu0 %v1605_v55, %s1352_s19 }
 0x45f   : > { %969 = vrot.lane.b32.xlu1 %v1616_v59, %s1348_s15  ;;  %1007 = vrot.lane.b32.xlu0 %v1605_v55, %s1355_s21 }
 0x463   : > { %989 = vrot.lane.b32.xlu1 %v1616_v59, %s1352_s19  ;;  %1027 = vrot.lane.b32.xlu0 %v1605_v55, %s1353_s20  ;;  %s346_s19 = scalar_lea.vmem %s1740_s7, %s1296_s11 }
 0x467   : > { %1009 = vrot.lane.b32.xlu1 %v1616_v59, %s1355_s21  ;;  %1047 = vrot.lane.b32.xlu0 %v1605_v55, %s1356_s22 }
 0x46b   : > { %1029 = vrot.lane.b32.xlu1 %v1616_v59, %s1353_s20  ;;  %1081 = vperm.xlu0 %1321, %v1078_v50   ;;  %v1022_v50 = vrot.slane %v1289_v2, %v1477_v10 }
 0x46f   : > { %1049 = vrot.lane.b32.xlu1 %v1616_v59, %s1356_s22 }
 0x4c1   : > { %v948_v52 = vpop.permute.xlu0 %947  ;;  %v908_v60 = vpop.permute.xlu1 %907 }
 0x4c5   : > { %v968_v63 = vpop.permute.xlu0 %967  ;;  %v928_v3 = vpop.permute.xlu1 %927 }
 0x4c9   : > { %v930_v13 = vpop.permute.xlu1 %929  ;;  %v910_v14 = vpop.permute.xlu0 %909 }
 0x4ca   : > { %v931_v15 = vsel %vm388_vm1, %v928_v3, %v930_v13  ;;  %v932_v16 = vsel %vm388_vm1, %v930_v13, %v928_v3  ;;  %v911_v17 = vsel %vm367_vm2, %v908_v60, %v910_v14  ;;  %v912_v18 = vsel %vm367_vm2, %v910_v14, %v908_v60 }
 0x4cb   : > { %v945_v19 = vmul.f32 %v938_v7, %v932_v16  ;;  %v946_v20 = vmul.f32 %v942_v8, %v931_v15  ;;  %v925_v21 = vmul.f32 %v918_v11, %v912_v18  ;;  %v926_v22 = vmul.f32 %v922_v12, %v911_v17 }
 0x4cc   : > { %v1042_v60 = vrot.slane %v1290_v49, %v1477_v10  ;;  %v1058_v7 = vrot.slane %v1291_v61, %v1474_v9  ;;  %v1062_v8 = vrot.slane %v1291_v61, %v1477_v10 }
 0x4cd   : > { %v1067_v25 = vpack.c.bf16 %v945_v19, %v925_v21  ;;  %v950_v26 = vpop.permute.xlu1 %949  ;;  %v1068_v27 = vpack.c.bf16 %v946_v20, %v926_v22  ;;  %v988_v29 = vpop.permute.xlu0 %987 }
 0x4ce   : > { %v951_v32 = vsel %vm410_vm3, %v948_v52, %v950_v26  ;;  %v952_v33 = vsel %vm410_vm3, %v950_v26, %v948_v52  ;;  %v1038_v52 = vrot.slane %v1290_v49, %v1474_v9 }
 0x4cf   : > { %1094 = vmatprep.subr.bf16.mxu1 %v1068_v27  ;;  %v965_v39 = vmul.f32 %v958_v5, %v952_v33  ;;  %v966_v40 = vmul.f32 %v962_v28, %v951_v32 }
 0x4d0   : > { %1095 = vmatpush1.bf16.msra.mxu1 %v1067_v25 }
 0x4d1   : > { %v970_v34 = vpop.permute.xlu1 %969  ;;  %v1008_v44 = vpop.permute.xlu0 %1007 }
 0x4d2   : > { %v971_v35 = vsel %vm432_vm0, %v968_v63, %v970_v34  ;;  %v972_v36 = vsel %vm432_vm0, %v970_v34, %v968_v63  ;;  %vm1084_vm0 = vcmask 588800  }
 0x4d3   : > { %v985_v41 = vmul.f32 %v978_v30, %v972_v36  ;;  %v986_v42 = vmul.f32 %v982_v31, %v971_v35 }
 0x4d5   : > { %v1069_v43 = vpack.c.bf16 %v985_v41, %v965_v39  ;;  %v990_v1 = vpop.permute.xlu1 %989  ;;  %v1070_v45 = vpack.c.bf16 %v986_v42, %v966_v40  ;;  %v1028_v57 = vpop.permute.xlu0 %1027 }
 0x4d6   : > { %v991_v46 = vsel %vm454_vm5, %v988_v29, %v990_v1  ;;  %v992_v47 = vsel %vm454_vm5, %v990_v1, %v988_v29 }
 0x4d7   : > { %v1005_v48 = vmul.f32 %v998_v37, %v991_v46  ;;  %v1006_v54 = vmul.f32 %v1002_v38, %v992_v47  ;;  %1096 = vmatprep.subr.bf16.mxu1 %v1070_v45 }
 0x4d8   : > { %1097 = vmatpush1.bf16.msra.mxu1 %v1069_v43 }
 0x4d9   : > { %v1071_v51 = vpack.c.bf16 %v1005_v48, %v1605_v55  ;;  %v1010_v53 = vpop.permute.xlu1 %1009  ;;  %v1072_v56 = vpack.c.bf16 %v1006_v54, %v1616_v59  ;;  %v1048_v15 = vpop.permute.xlu0 %1047 }
 0x4da   : > { %v1011_v55 = vsel %vm476_vm7, %v1008_v44, %v1010_v53  ;;  %v1012_v59 = vsel %vm476_vm7, %v1010_v53, %v1008_v44 }
 0x4db   : > { %1098 = vmatprep.subr.bf16.mxu1 %v1072_v56  ;;  %v1025_v11 = vmul.f32 %v1018_v58, %v1011_v55  ;;  %v1026_v12 = vmul.f32 %v1022_v50, %v1012_v59 }
 0x4dc   : > { %1099 = vmatpush1.bf16.msra.mxu1 %v1071_v51 }
 0x4dd   : > { %v1030_v62 = vpop.permute.xlu1 %1029 }
 0x4de   : > { %v1031_v63 = vsel %vm498_vm6, %v1028_v57, %v1030_v62  ;;  %v1032_v3 = vsel %vm498_vm6, %v1030_v62, %v1028_v57 }
 0x4df   : > { %v1045_v13 = vmul.f32 %v1038_v52, %v1031_v63  ;;  %v1046_v14 = vmul.f32 %v1042_v60, %v1032_v3 }
 0x4e1   : > { %v1073_v16 = vpack.c.bf16 %v1045_v13, %v1025_v11  ;;  %v1050_v17 = vpop.permute.xlu1 %1049  ;;  %v1074_v18 = vpack.c.bf16 %v1046_v14, %v1026_v12 }
 0x4e2   : > { %v1051_v19 = vsel %vm520_vm8, %v1048_v15, %v1050_v17  ;;  %v1052_v20 = vsel %vm520_vm8, %v1050_v17, %v1048_v15 }
 0x4e3   : > { %v1065_v21 = vmul.f32 %v1058_v7, %v1051_v19  ;;  %v1066_v22 = vmul.f32 %v1062_v8, %v1052_v20  ;;  %1100 = vmatprep.subr.bf16.mxu1 %v1074_v18 }
 0x4e4   : > { %1101 = vmatpush1.bf16.msra.mxu1 %v1073_v16 }
 0x4e5   : > { %v1075_v9 = vpack.c.bf16 %v1065_v21, %v1065_v21  ;;  %v1076_v10 = vpack.c.bf16 %v1066_v22, %v1066_v22 }
 0x4e7   : > { %1292 = vmatprep.subr.msk.bf16.mxu1 %vm562_vm4, %v1076_v10  ;;  %v1089_v23 = vsel %vm562_vm4, %v1075_v9, 0 }
 0x4e8   : > { %1103 = vmatpush1.bf16.msra.mxu1 %v1089_v23 }
 0x4ea   : > { %v1082_v6 = vpop.permute.xlu0 %1081 }
 0x4eb   : > { %1293 = vmatmul.mubr.msk.bf16.vlgmr.msra.gmra.mrb[4].mxu1 %vm1084_vm0, %v1077_v24 }
 0x5be   : > { %v1128_v25 = vpop.f32.mrb[4].mxu1 }
 0x5bf   : > { %v1129_v26 = vadd.f32 %v1128_v25, %v1082_v6  ;;  %v1130_v27 = vpop.f32.mrb[5].mxu1 }
 0x5c0   : > { %v1131_v5 = vadd.f32 %v1130_v27, %v1082_v6  ;;  %v1132_v28 = vpop.f32.mrb[6].mxu1 }
 0x5c1   : > { %v1133_v29 = vpop.f32.mrb[7].mxu1 }
 0x5c2   : > { %v1137_v30 = vcombine.low %v1129_v26, %v1131_v5 }
 0x5c4   : > { %v1139_v31 = vadd.f32 %v1137_v30, %v1424_v0 }
 0x5c6   : > { %1140 = vst [vmem:[%s346_s19] sm:$0xff] %v1139_v31 }
 0x5c7 PF: > { %s20_s30 = sadd.s32 1, %s1346_s30  }
 0x5c8   : > { %p17_p4 = scmp.ge.s32.totalorder %s20_s30, 4  }
 0x5ca   :  { %19 = sbr.rel (!%p17_p4) target bundleno = 1 (0x1), region = 109 }

</bundles_post_ra>
